<compile_context>
chip_gen: v6e
topology: v6e:2x2x1
jax: 0.10.0
libtpu: 0.0.40
codegen_flags: <defaults>
</compile_context>

<pallas_src>
import functools
import itertools

import numpy as np
import jax
import jax.numpy as jnp
from jax.experimental import pallas as pl
from jax.experimental.pallas import tpu as pltpu

# -------------------- synthetic cfg (deterministic, in-script) --------------------
CLASS_WEIGHT = 2.0        # cfg.class_weight
MASK_WEIGHT = 5.0         # cfg.mask_weight
DICE_WEIGHT = 5.0         # cfg.dice_weight
NO_OBJECT_WEIGHT = 0.1    # cfg.no_object_weight (eos_coef)
NUM_CLASSES = 4           # cfg.num_classes  -> logits have NUM_CLASSES + 1 channels
# cfg.num_points / oversample_ratio / importance_sample_ratio:
# TODO(synk): uncertainty-based random point sampling has no clean Pallas equivalent;
#             we evaluate the mask losses on all H*W points instead (num_points = H*W).
# cfg.deep_supervision = False (no aux outputs in this synthetic forward).


# -------------------- generation-aware sizing --------------------
def _device_kind():
    try:
        return jax.devices()[0].device_kind.lower()
    except Exception:
        return ""


def _supports_bf16_elementwise():
    # v6e / v7x have bf16 VPU + EUP; v5e (and older) do not.
    k = _device_kind()
    return ("v6" in k) or ("v7" in k) or ("7x" in k)


def _vmem_capacity_bytes():
    try:
        info = pltpu.get_tpu_info()
        for name in ("vmem_capacity_bytes", "vmem_size_bytes", "vmem_bytes"):
            v = getattr(info, name, None)
            if v:
                return int(v)
    except Exception:
        pass
    k = _device_kind()
    return (64 if (("v7" in k) or ("7x" in k)) else 128) * 1024 * 1024


_VMEM_CAP = _vmem_capacity_bytes()
_VMEM_LIMIT = int(0.75 * _VMEM_CAP)     # scoped VMEM limit handed to Mosaic
_TILE_BUDGET = int(0.55 * _VMEM_CAP)    # per-step working-set budget for tile picking


def _pick_point_tile(P, q, n, esize, budget_bytes):
    """Largest 128-multiple divisor of P whose per-step working set fits budget_bytes.
    Working set: double-buffered bf16 mask blocks, ~6 live [Q,TP] elementwise
    temporaries in the elementwise dtype, and the stacked bf16 [2Q,TP] MXU operand."""
    if P % 128 != 0:
        return P                           # single full block (padded in the wrapper)

    def footprint(tp):
        dbuf_inputs = 2 * 2 * (q + n) * tp      # 2 bufs * bf16 * (Q+N) rows
        temps = 6 * esize * q * tp              # x, e, softplus, r, sig, select temps
        stacked = 2 * 2 * q * tp                # bf16 [2Q, TP] stacked LHS
        return dbuf_inputs + temps + stacked

    tp = P
    while tp > 128 and (P % tp != 0 or footprint(tp) > budget_bytes):
        tp -= 128
    return tp


def _pick_row_tile(P, budget_bytes=4 * 1024 * 1024):
    """Point tile for the matched-mask loss kernel (one mask row per grid step)."""
    if P % 128 != 0:
        return P

    def footprint(tp):
        return tp * (2 * 4 + 2 * 2 + 8 * 4)     # dbuf f32 src + dbuf bf16 tgt + f32 temps

    tp = P
    while tp > 128 and (P % tp != 0 or footprint(tp) > budget_bytes):
        tp -= 128
    return tp


# -------------------- kernel 1: pairwise Hungarian matching cost --------------------
def _cost_kernel(prob_ref, onehot_ref, tsum_ref, outm_ref, tgtm_ref, cost_ref,
                 stacked_acc, sp_acc, sx_acc,
                 *, w_class, w_mask, w_dice, inv_points, compute_dtype):
    p_step = pl.program_id(1)
    dn = (((1,), (1,)), ((), ()))              # contract the point axis: [*,TP] x [N,TP] -> [*,N]

    @pl.when(p_step == 0)
    def _init():
        stacked_acc[...] = jnp.zeros_like(stacked_acc)
        sp_acc[...] = jnp.zeros_like(sp_acc)
        sx_acc[...] = jnp.zeros_like(sx_acc)

    xb = outm_ref[0]                           # [Q, TP] bf16 pred mask logits
    tb = tgtm_ref[0]                           # [N, TP] bf16 binary targets (exact in bf16)
    x = xb.astype(compute_dtype)               # bf16 on v6e/v7x, f32 on v5e

    # one transcendental sweep: e = exp(-|x|) drives both softplus(x) and sigmoid(x)
    e = jnp.exp(-jnp.abs(x))
    softplus = jnp.maximum(x, 0.0) + jnp.log1p(e)              # log(1 + exp(x)), stable
    r = pl.reciprocal(1.0 + e, approx=True)                     # EUP slot, ~free
    sig = jnp.where(x >= 0.0, r, e * r)                         # sigmoid(x)

    # single stacked MXU matmul: [x ; sigmoid(x)] (2Q rows) against the target tile,
    # filling the MXU M dimension instead of three tiny-output matmuls.
    lhs = jnp.concatenate([xb, sig.astype(jnp.bfloat16)], axis=0)   # [2Q, TP] bf16
    stacked_acc[...] += jax.lax.dot_general(lhs, tb, dn,
                                            preferred_element_type=jnp.float32)
    sp_acc[...] += jnp.sum(softplus, axis=-1, keepdims=True, dtype=jnp.float32)
    sx_acc[...] += jnp.sum(sig, axis=-1, keepdims=True, dtype=jnp.float32)

    @pl.when(p_step == pl.num_programs(1) - 1)
    def _finalize():
        q = sp_acc.shape[0]
        prob = prob_ref[0]                     # [Q, C+1] softmax probabilities
        oh = onehot_ref[0]                     # [N, C+1] one-hot target labels
        tsum = tsum_ref[0]                     # [1, N]   sum_p t (hoisted to wrapper)
        # cost_class = -out_prob[:, tgt_ids]
        cost_class = -jax.lax.dot_general(prob, oh, dn, preferred_element_type=jnp.float32)
        acc = stacked_acc[...]
        xt, sxt = acc[:q], acc[q:]
        # fused pairwise BCE-with-logits, averaged over points:
        #   softplus(-x)*t + softplus(x)*(1-t) == softplus(x) - x*t
        cost_mask = (sp_acc[...] - xt) * inv_points
        # batch_dice_loss with row-reduced denominator ((Q,1) + (1,N) broadcast)
        cost_dice = 1.0 - (2.0 * sxt + 1.0) / (sx_acc[...] + tsum + 1.0)
        # TODO(synk): at real N (~100) consider a lane-dense padded cost output; with
        #             tiny N this once-per-image masked store is negligible.
        cost_ref[0] = w_mask * cost_mask + w_class * cost_class + w_dice * cost_dice


def pairwise_match_cost(prob, onehot, tsum, out_masks_bf, tgt_masks_bf, *, num_points):
    B, Q, C1 = prob.shape
    N = onehot.shape[1]
    P = out_masks_bf.shape[-1]

    def build(compute_dtype):
        esize = jnp.dtype(compute_dtype).itemsize
        TP = _pick_point_tile(P, Q, N, esize, _TILE_BUDGET)
        kern = functools.partial(
            _cost_kernel, w_class=CLASS_WEIGHT, w_mask=MASK_WEIGHT, w_dice=DICE_WEIGHT,
            inv_points=1.0 / float(num_points), compute_dtype=compute_dtype)
        return pl.pallas_call(
            kern,
            out_shape=jax.ShapeDtypeStruct((B, Q, N), jnp.float32),
            grid=(B, P // TP),
            in_specs=[
                pl.BlockSpec((1, Q, C1), lambda b, p: (b, 0, 0)),
                pl.BlockSpec((1, N, C1), lambda b, p: (b, 0, 0)),
                pl.BlockSpec((1, 1, N), lambda b, p: (b, 0, 0)),
                # TODO(synk): on v5e, if profiles show exposed DMA on these two streams,
                #             add pipeline_mode=pl.Buffered(3).
                pl.BlockSpec((1, Q, TP), lambda b, p: (b, 0, p)),
                pl.BlockSpec((1, N, TP), lambda b, p: (b, 0, p)),
            ],
            out_specs=pl.BlockSpec((1, Q, N), lambda b, p: (b, 0, 0)),
            scratch_shapes=[
                pltpu.VMEM((2 * Q, N), jnp.float32),   # [sum_p x*t ; sum_p sig(x)*t]
                pltpu.VMEM((Q, 1), jnp.float32),       # sum_p softplus(x)
                pltpu.VMEM((Q, 1), jnp.float32),       # sum_p sigmoid(x)
            ],
            compiler_params=pltpu.CompilerParams(
                dimension_semantics=("parallel", "arbitrary"),
                vmem_limit_bytes=_VMEM_LIMIT),
        )

    dtypes = (jnp.bfloat16, jnp.float32) if _supports_bf16_elementwise() else (jnp.float32,)
    last_err = None
    for dt in dtypes:
        try:
            return jax.block_until_ready(
                build(dt)(prob, onehot, tsum, out_masks_bf, tgt_masks_bf))
        except Exception as err:   # bf16 transcendental lowering unavailable -> f32 path
            last_err = err
    raise last_err


# ---------- kernel 2: fused weighted CE (loss_ce) + matched mask BCE/dice ----------
def _ce_mask_loss_kernel(src_rows_ref, tgt_rows_ref,              # scalar-prefetch (unused in body)
                         logits_ref, onehot_ref, w_ref, src_ref, tgt_ref, out_ref,
                         bce_m, sxt_m, sx_m, t_m, bce_tot, dice_tot,
                         *, inv_points):
    m = pl.program_id(0)
    p = pl.program_id(1)
    last_m = pl.num_programs(0) - 1
    last_p = pl.num_programs(1) - 1

    @pl.when(jnp.logical_and(m == 0, p == 0))
    def _init_totals():
        bce_tot[...] = jnp.zeros_like(bce_tot)
        dice_tot[...] = jnp.zeros_like(dice_tot)

    @pl.when(p == 0)
    def _init_mask():
        bce_m[...] = jnp.zeros_like(bce_m)
        sxt_m[...] = jnp.zeros_like(sxt_m)
        sx_m[...] = jnp.zeros_like(sx_m)
        t_m[...] = jnp.zeros_like(t_m)

    # ---- matched-pair sigmoid BCE + dice partial sums over this point tile ----
    x = src_ref[0]                             # [1, TP] matched pred mask logits (f32)
    t = tgt_ref[0].astype(jnp.float32)         # [1, TP] binary targets (bf16 exact)
    e = jnp.exp(-jnp.abs(x))                   # shared transcendental
    softplus = jnp.maximum(x, 0.0) + jnp.log1p(e)
    r = pl.reciprocal(1.0 + e, approx=True)    # EUP reciprocal instead of a full divide
    sig = jnp.where(x >= 0.0, r, e * r)

    bce_m[...] += jnp.sum(softplus - x * t, axis=-1, keepdims=True)
    sxt_m[...] += jnp.sum(sig * t, axis=-1, keepdims=True)
    sx_m[...] += jnp.sum(sig, axis=-1, keepdims=True)
    t_m[...] += jnp.sum(t, axis=-1, keepdims=True)

    @pl.when(p == last_p)
    def _finish_mask():
        bce_tot[...] += bce_m[...] * inv_points          # mean over points, sum over masks
        dice_tot[...] += 1.0 - (2.0 * sxt_m[...] + 1.0) / (sx_m[...] + t_m[...] + 1.0)

    @pl.when(jnp.logical_and(m == last_m, p == last_p))
    def _finalize():
        # ---- weighted cross-entropy over all queries (loss_ce numerator / denominator) ----
        logits = logits_ref[...]               # [R, C+1]
        oh = onehot_ref[...]                   # [R, C+1] one-hot target classes (incl. no-object)
        w = w_ref[...]                         # [1, C+1] per-class weight (eos_coef on last class)
        logp = jax.nn.log_softmax(logits, axis=-1)
        nll = -jnp.sum(oh * logp, axis=-1, keepdims=True)
        row_w = jnp.sum(oh * w, axis=-1, keepdims=True)
        ce_num = jnp.sum(row_w * nll, axis=0, keepdims=True)     # (1, 1)
        ce_den = jnp.sum(row_w, axis=0, keepdims=True)           # (1, 1)
        # single lane-dense output row: [ce_num, ce_den, bce_sum, dice_sum, 0, ...]
        lane = jax.lax.broadcasted_iota(jnp.int32, (1, 128), 1)
        out_ref[...] = (jnp.where(lane == 0, ce_num, 0.0)
                        + jnp.where(lane == 1, ce_den, 0.0)
                        + jnp.where(lane == 2, bce_tot[...], 0.0)
                        + jnp.where(lane == 3, dice_tot[...], 0.0))


def ce_and_mask_losses(logits2d, onehot2d, class_weights, pred_rows, tgt_rows_arr,
                       src_rows, tgt_rows, *, num_points):
    """loss_ce + matched-mask BCE/dice.  Matched rows are gathered straight from the
    flattened mask arrays via scalar-prefetch row indices (no materialized gather)."""
    M = int(src_rows.shape[0])
    BQ, C1 = logits2d.shape
    P = pred_rows.shape[-1]
    TP = _pick_row_tile(P)
    kern = functools.partial(_ce_mask_loss_kernel, inv_points=1.0 / float(num_points))
    res = pl.pallas_call(
        kern,
        out_shape=jax.ShapeDtypeStruct((1, 128), jnp.float32),
        grid_spec=pltpu.PrefetchScalarGridSpec(
            num_scalar_prefetch=2,
            grid=(M, P // TP),
            in_specs=[
                pl.BlockSpec((BQ, C1), lambda m, p, sr, tr: (0, 0)),
                pl.BlockSpec((BQ, C1), lambda m, p, sr, tr: (0, 0)),
                pl.BlockSpec((1, C1), lambda m, p, sr, tr: (0, 0)),
                pl.BlockSpec((1, 1, TP), lambda m, p, sr, tr: (sr[m], 0, p)),
                pl.BlockSpec((1, 1, TP), lambda m, p, sr, tr: (tr[m], 0, p)),
            ],
            out_specs=pl.BlockSpec((1, 128), lambda m, p, sr, tr: (0, 0)),
            scratch_shapes=[pltpu.VMEM((1, 1), jnp.float32) for _ in range(6)],
        ),
        compiler_params=pltpu.CompilerParams(
            # TODO(synk): on v7x a parallel mask-tile axis (with per-core partial sums)
            #             would use both TensorCores; kept serial for simplicity here.
            dimension_semantics=("arbitrary", "arbitrary"),
            vmem_limit_bytes=_VMEM_LIMIT),
    )(src_rows, tgt_rows, logits2d, onehot2d, class_weights, pred_rows, tgt_rows_arr)
    loss_ce = res[0, 0] / res[0, 1]            # torch weighted-CE 'mean' reduction
    return loss_ce, res[0, 2], res[0, 3]


# -------------------- host-side exact assignment --------------------
def exact_assignment(cost_np):
    # TODO(synk): scipy.optimize.linear_sum_assignment (Hungarian) has no Pallas
    # equivalent; for tiny Q, N we recover the exact optimum by brute force on host.
    Q, N = cost_np.shape
    best_cost, best_perm = None, None
    for perm in itertools.permutations(range(Q), N):
        c = sum(cost_np[perm[j], j] for j in range(N))
        if best_cost is None or c < best_cost:
            best_cost, best_perm = c, perm
    src = np.asarray(best_perm)
    tgt = np.arange(N)
    order = np.argsort(src)
    return src[order], tgt[order]


# -------------------- full forward (FocalDiceLoss.forward) --------------------
def focal_dice_loss(pred_logits, pred_masks, tgt_labels, tgt_masks):
    B, Q, C1 = pred_logits.shape
    N = tgt_labels.shape[1]
    H, W = pred_masks.shape[-2:]
    P = H * W
    P_pad = ((P + 127) // 128) * 128

    out_prob = jax.nn.softmax(pred_logits.astype(jnp.float32), axis=-1)
    tgt_onehot = jax.nn.one_hot(tgt_labels, C1, dtype=jnp.float32)

    pred_flat = pred_masks.reshape(B, Q, P).astype(jnp.float32)
    tgt_flat = tgt_masks.reshape(B, N, P).astype(jnp.float32)
    if P_pad != P:
        # pad with (pred=-1e4, tgt=0): softplus/sigmoid/dice contributions are exactly 0,
        # so all sums (divided by the original num_points) are unchanged.
        pred_flat = jnp.pad(pred_flat, ((0, 0), (0, 0), (0, P_pad - P)), constant_values=-1e4)
        tgt_flat = jnp.pad(tgt_flat, ((0, 0), (0, 0), (0, P_pad - P)), constant_values=0.0)

    # sum_p t is query-independent -> hoisted out of kernel 1 (replaces the ones-row matmul).
    tsum = jnp.sum(tgt_flat, axis=-1).reshape(B, 1, N)

    # bf16 copies feed the pairwise cost matmuls (native MXU rate, half the DMA bytes);
    # binary targets are exact in bf16, pred logits only perturb the matching cost.
    out_masks_bf = pred_flat.astype(jnp.bfloat16)
    tgt_masks_bf = tgt_flat.astype(jnp.bfloat16)

    # 1) Hungarian matcher cost (Pallas), assignment on host.
    cost = pairwise_match_cost(out_prob, tgt_onehot, tsum, out_masks_bf, tgt_masks_bf,
                               num_points=P)
    cost_np = np.asarray(jax.device_get(cost))
    labels_np = np.asarray(jax.device_get(tgt_labels))

    target_classes = np.full((B, Q), NUM_CLASSES, dtype=np.int32)  # no-object everywhere
    bidx, sidx, tidx = [], [], []
    for b in range(B):
        src_idx, tgt_idx = exact_assignment(cost_np[b])
        target_classes[b, src_idx] = labels_np[b, tgt_idx]
        bidx.extend([b] * len(src_idx))
        sidx.extend(int(s) for s in src_idx)
        tidx.extend(int(t) for t in tgt_idx)
    bidx = np.asarray(bidx, np.int32)
    sidx = np.asarray(sidx, np.int32)
    tidx = np.asarray(tidx, np.int32)
    src_rows = jnp.asarray(bidx * Q + sidx)            # rows into [B*Q, 1, P]
    tgt_rows = jnp.asarray(bidx * N + tidx)            # rows into [B*N, 1, P]

    # Row-major views for the scalar-prefetch gather (no materialized [M,P] gather).
    # pred rows stay f32 for loss fidelity; targets are bf16 (binary -> exact).
    pred_rows3 = pred_flat.reshape(B * Q, 1, P_pad)
    tgt_rows3 = tgt_masks_bf.reshape(B * N, 1, P_pad)

    # 2+3) one fused tiled Pallas call: loss_ce + matched BCE/dice reductions.
    empty_weight = np.ones((1, C1), np.float32)
    empty_weight[0, -1] = NO_OBJECT_WEIGHT
    tc_onehot = jax.nn.one_hot(jnp.asarray(target_classes), C1, dtype=jnp.float32)
    loss_ce, bce_sum, dice_sum = ce_and_mask_losses(
        pred_logits.reshape(B * Q, C1).astype(jnp.float32),
        tc_onehot.reshape(B * Q, C1),
        jnp.asarray(empty_weight),
        pred_rows3, tgt_rows3, src_rows, tgt_rows, num_points=P)

    # TODO(synk): num_masks assumes exactly N targets per image (true for this synthetic
    # input); the PyTorch criterion normalizes by the actual total number of target masks.
    num_masks = max(float(B * N), 1.0)         # world_size == 1
    loss_mask = bce_sum / num_masks
    loss_dice = dice_sum / num_masks

    # Final weight_dict scaling (FocalDiceLoss.forward).
    return {
        "loss_ce": loss_ce * CLASS_WEIGHT,
        "loss_mask": loss_mask * MASK_WEIGHT,
        "loss_dice": loss_dice * DICE_WEIGHT,
    }


if __name__ == "__main__":
    B, Q, H, W = 2, 8, 16, 16
    N = 4                      # targets per image
    C1 = NUM_CLASSES + 1

    key = jax.random.PRNGKey(0)
    k1, k2, k3, k4 = jax.random.split(key, 4)
    pred_logits = jax.random.normal(k1, (B, Q, C1), jnp.float32)
    pred_masks = jax.random.normal(k2, (B, Q, H, W), jnp.float32)     # NCHW-style
    tgt_labels = jax.random.randint(k3, (B, N), 0, NUM_CLASSES)
    tgt_masks = (jax.random.uniform(k4, (B, N, H, W)) > 0.5).astype(jnp.float32)

    losses = focal_dice_loss(pred_logits, pred_masks, tgt_labels, tgt_masks)
    for v in losses.values():
        jax.block_until_ready(v)
    print("KERNEL_OK")
</pallas_src>

<mosaic_0001>
module attributes {stable_mosaic.version = 11 : i64} {
  func.func @_cost_kernel(%arg0: i32, %arg1: i32, %arg2: memref<1x8x5xf32, #tpu.memory_space<vmem>>, %arg3: memref<1x4x5xf32, #tpu.memory_space<vmem>>, %arg4: memref<1x1x4xf32, #tpu.memory_space<vmem>>, %arg5: memref<1x8x256xbf16, #tpu.memory_space<vmem>>, %arg6: memref<1x4x256xbf16, #tpu.memory_space<vmem>>, %arg7: memref<1x8x4xf32, #tpu.memory_space<vmem>>, %arg8: memref<16x4xf32, #tpu.memory_space<vmem>>, %arg9: memref<8x1xf32, #tpu.memory_space<vmem>>, %arg10: memref<8x1xf32, #tpu.memory_space<vmem>>) attributes {dimension_semantics = [#tpu.dimension_semantics<parallel>, #tpu.dimension_semantics<arbitrary>], iteration_bounds = array<i64: 2, 1>, scalar_prefetch = 0 : i64, scratch_operands = 3 : i64, tpu.core_type = #tpu.core_type<tc>, window_params = [{transform_indices = @transform_0, window_bounds = array<i64: 1, 8, 5>}, {transform_indices = @transform_1, window_bounds = array<i64: 1, 4, 5>}, {transform_indices = @transform_2, window_bounds = array<i64: 1, 1, 4>}, {transform_indices = @transform_3, window_bounds = array<i64: 1, 8, 256>}, {transform_indices = @transform_4, window_bounds = array<i64: 1, 4, 256>}, {transform_indices = @transform_5, window_bounds = array<i64: 1, 8, 4>}]} {
    %c0_i32 = arith.constant 0 : i32
    %0 = arith.cmpi eq, %arg1, %c0_i32 : i32
    %1 = arith.extui %0 : i1 to i32
    %c0_i32_0 = arith.constant 0 : i32
    %2 = arith.cmpi ne, %1, %c0_i32_0 : i32
    scf.if %2 {
      %cst_26 = arith.constant 0.000000e+00 : f32
      %42 = vector.broadcast %cst_26 : f32 to vector<16x4xf32>
      %c0_27 = arith.constant 0 : index
      %c0_28 = arith.constant 0 : index
      %43 = vector.load %arg8[%c0_27, %c0_28] : memref<16x4xf32, #tpu.memory_space<vmem>>, vector<16x4xf32>
      tpu.vector_store %arg8[%c0_27, %c0_28], %42 {strides = array<i32>} : memref<16x4xf32, #tpu.memory_space<vmem>>, vector<16x4xf32>,
      %cst_29 = arith.constant 0.000000e+00 : f32
      %44 = vector.broadcast %cst_29 : f32 to vector<8x1xf32>
      %c0_30 = arith.constant 0 : index
      %c0_31 = arith.constant 0 : index
      %45 = vector.load %arg9[%c0_30, %c0_31] : memref<8x1xf32, #tpu.memory_space<vmem>>, vector<8x1xf32>
      tpu.vector_store %arg9[%c0_30, %c0_31], %44 {strides = array<i32>} : memref<8x1xf32, #tpu.memory_space<vmem>>, vector<8x1xf32>,
      %cst_32 = arith.constant 0.000000e+00 : f32
      %46 = vector.broadcast %cst_32 : f32 to vector<8x1xf32>
      %c0_33 = arith.constant 0 : index
      %c0_34 = arith.constant 0 : index
      %47 = vector.load %arg10[%c0_33, %c0_34] : memref<8x1xf32, #tpu.memory_space<vmem>>, vector<8x1xf32>
      tpu.vector_store %arg10[%c0_33, %c0_34], %46 {strides = array<i32>} : memref<8x1xf32, #tpu.memory_space<vmem>>, vector<8x1xf32>,
    } else {
    }
    %c0 = arith.constant 0 : index
    %c0_1 = arith.constant 0 : index
    %c0_2 = arith.constant 0 : index
    %3 = vector.load %arg5[%c0, %c0_1, %c0_2] : memref<1x8x256xbf16, #tpu.memory_space<vmem>>, vector<1x8x256xbf16>
    %4 = vector.shape_cast %3 : vector<1x8x256xbf16> to vector<8x256xbf16>
    %c0_3 = arith.constant 0 : index
    %c0_4 = arith.constant 0 : index
    %c0_5 = arith.constant 0 : index
    %5 = vector.load %arg6[%c0_3, %c0_4, %c0_5] : memref<1x4x256xbf16, #tpu.memory_space<vmem>>, vector<1x4x256xbf16>
    %6 = vector.shape_cast %5 : vector<1x4x256xbf16> to vector<4x256xbf16>
    %7 = arith.extf %4 : vector<8x256xbf16> to vector<8x256xf32>
    %8 = math.absf %7 : vector<8x256xf32>
    %cst = arith.constant 0.000000e+00 : f32
    %9 = vector.broadcast %cst : f32 to vector<8x256xf32>
    %10 = arith.subf %9, %8 : vector<8x256xf32>
    %11 = math.exp %10 : vector<8x256xf32>
    %cst_6 = arith.constant 0.000000e+00 : f32
    %12 = vector.broadcast %cst_6 : f32 to vector<8x256xf32>
    %13 = arith.maximumf %7, %12 : vector<8x256xf32>
    %14 = math.log1p %11 : vector<8x256xf32>
    %15 = arith.addf %13, %14 : vector<8x256xf32>
    %cst_7 = arith.constant 1.000000e+00 : f32
    %16 = vector.broadcast %cst_7 : f32 to vector<8x256xf32>
    %17 = arith.addf %16, %11 : vector<8x256xf32>
    %18 = tpu.reciprocal %17 {approx = true} : vector<8x256xf32> -> vector<8x256xf32>
    %cst_8 = arith.constant 0.000000e+00 : f32
    %19 = vector.broadcast %cst_8 : f32 to vector<8x256xf32>
    %20 = arith.cmpf oge, %7, %19 : vector<8x256xf32>
    %21 = arith.mulf %11, %18 : vector<8x256xf32>
    %22 = arith.select %20, %18, %21 : vector<8x256xi1>, vector<8x256xf32>
    %23 = arith.truncf %22 : vector<8x256xf32> to vector<8x256xbf16>
    %24 = tpu.concatenate %4, %23 in 0 : vector<8x256xbf16>, vector<8x256xbf16> -> vector<16x256xbf16>
    %c0_9 = arith.constant 0 : index
    %c0_10 = arith.constant 0 : index
    %25 = vector.load %arg8[%c0_9, %c0_10] : memref<16x4xf32, #tpu.memory_space<vmem>>, vector<16x4xf32>
    %cst_11 = arith.constant dense<0.000000e+00> : vector<16x4xf32>
    %26 = tpu.matmul %24, %6, %cst_11 {dimension_numbers = #tpu.dot_dimension_numbers<[1], [1], [0], [0], [0, 0, 1, 0], [], []>} : vector<16x256xbf16>, vector<4x256xbf16>, vector<16x4xf32> -> vector<16x4xf32>
    %27 = arith.addf %25, %26 : vector<16x4xf32>
    %c0_12 = arith.constant 0 : index
    %c0_13 = arith.constant 0 : index
    %28 = vector.load %arg8[%c0_12, %c0_13] : memref<16x4xf32, #tpu.memory_space<vmem>>, vector<16x4xf32>
    tpu.vector_store %arg8[%c0_12, %c0_13], %27 {strides = array<i32>} : memref<16x4xf32, #tpu.memory_space<vmem>>, vector<16x4xf32>,
    %c0_14 = arith.constant 0 : index
    %c0_15 = arith.constant 0 : index
    %29 = vector.load %arg9[%c0_14, %c0_15] : memref<8x1xf32, #tpu.memory_space<vmem>>, vector<8x1xf32>
    %cst_16 = arith.constant dense<0.000000e+00> : vector<8xf32>
    %30 = vector.multi_reduction <add>, %15, %cst_16 [1] : vector<8x256xf32> to vector<8xf32>
    %31 = vector.shape_cast %30 : vector<8xf32> to vector<8x1xf32>
    %32 = arith.addf %29, %31 : vector<8x1xf32>
    %c0_17 = arith.constant 0 : index
    %c0_18 = arith.constant 0 : index
    %33 = vector.load %arg9[%c0_17, %c0_18] : memref<8x1xf32, #tpu.memory_space<vmem>>, vector<8x1xf32>
    tpu.vector_store %arg9[%c0_17, %c0_18], %32 {strides = array<i32>} : memref<8x1xf32, #tpu.memory_space<vmem>>, vector<8x1xf32>,
    %c0_19 = arith.constant 0 : index
    %c0_20 = arith.constant 0 : index
    %34 = vector.load %arg10[%c0_19, %c0_20] : memref<8x1xf32, #tpu.memory_space<vmem>>, vector<8x1xf32>
    %cst_21 = arith.constant dense<0.000000e+00> : vector<8xf32>
    %35 = vector.multi_reduction <add>, %22, %cst_21 [1] : vector<8x256xf32> to vector<8xf32>
    %36 = vector.shape_cast %35 : vector<8xf32> to vector<8x1xf32>
    %37 = arith.addf %34, %36 : vector<8x1xf32>
    %c0_22 = arith.constant 0 : index
    %c0_23 = arith.constant 0 : index
    %38 = vector.load %arg10[%c0_22, %c0_23] : memref<8x1xf32, #tpu.memory_space<vmem>>, vector<8x1xf32>
    tpu.vector_store %arg10[%c0_22, %c0_23], %37 {strides = array<i32>} : memref<8x1xf32, #tpu.memory_space<vmem>>, vector<8x1xf32>,
    %c0_i32_24 = arith.constant 0 : i32
    %39 = arith.cmpi eq, %arg1, %c0_i32_24 : i32
    %40 = arith.extui %39 : i1 to i32
    %c0_i32_25 = arith.constant 0 : i32
    %41 = arith.cmpi ne, %40, %c0_i32_25 : i32
    scf.if %41 {
      %c0_26 = arith.constant 0 : index
      %c0_27 = arith.constant 0 : index
      %c0_28 = arith.constant 0 : index
      %42 = vector.load %arg2[%c0_26, %c0_27, %c0_28] : memref<1x8x5xf32, #tpu.memory_space<vmem>>, vector<1x8x5xf32>
      %43 = vector.shape_cast %42 : vector<1x8x5xf32> to vector<8x5xf32>
      %c0_29 = arith.constant 0 : index
      %c0_30 = arith.constant 0 : index
      %c0_31 = arith.constant 0 : index
      %44 = vector.load %arg3[%c0_29, %c0_30, %c0_31] : memref<1x4x5xf32, #tpu.memory_space<vmem>>, vector<1x4x5xf32>
      %45 = vector.shape_cast %44 : vector<1x4x5xf32> to vector<4x5xf32>
      %c0_32 = arith.constant 0 : index
      %c0_33 = arith.constant 0 : index
      %c0_34 = arith.constant 0 : index
      %46 = vector.load %arg4[%c0_32, %c0_33, %c0_34] : memref<1x1x4xf32, #tpu.memory_space<vmem>>, vector<1x1x4xf32>
      %47 = vector.shape_cast %46 : vector<1x1x4xf32> to vector<1x4xf32>
      %cst_35 = arith.constant dense<0.000000e+00> : vector<8x4xf32>
      %48 = tpu.matmul %43, %45, %cst_35 {dimension_numbers = #tpu.dot_dimension_numbers<[1], [1], [0], [0], [0, 0, 1, 0], [], []>} : vector<8x5xf32>, vector<4x5xf32>, vector<8x4xf32> -> vector<8x4xf32>
      %cst_36 = arith.constant 0.000000e+00 : f32
      %49 = vector.broadcast %cst_36 : f32 to vector<8x4xf32>
      %50 = arith.subf %49, %48 : vector<8x4xf32>
      %c0_37 = arith.constant 0 : index
      %c0_38 = arith.constant 0 : index
      %51 = vector.load %arg8[%c0_37, %c0_38] : memref<16x4xf32, #tpu.memory_space<vmem>>, vector<16x4xf32>
      %52 = vector.extract_strided_slice %51 {offsets = [0, 0], sizes = [8, 4], strides = [1, 1]} : vector<16x4xf32> to vector<8x4xf32>
      %53 = vector.extract_strided_slice %51 {offsets = [8, 0], sizes = [8, 4], strides = [1, 1]} : vector<16x4xf32> to vector<8x4xf32>
      %c0_39 = arith.constant 0 : index
      %c0_40 = arith.constant 0 : index
      %54 = vector.load %arg9[%c0_39, %c0_40] : memref<8x1xf32, #tpu.memory_space<vmem>>, vector<8x1xf32>
      %55 = vector.broadcast %54 : vector<8x1xf32> to vector<8x4xf32>
      %56 = arith.subf %55, %52 : vector<8x4xf32>
      %cst_41 = arith.constant 3.906250e-03 : f32
      %57 = vector.broadcast %cst_41 : f32 to vector<8x4xf32>
      %58 = arith.mulf %56, %57 : vector<8x4xf32>
      %cst_42 = arith.constant 2.000000e+00 : f32
      %59 = vector.broadcast %cst_42 : f32 to vector<8x4xf32>
      %60 = arith.mulf %59, %53 : vector<8x4xf32>
      %cst_43 = arith.constant 1.000000e+00 : f32
      %61 = vector.broadcast %cst_43 : f32 to vector<8x4xf32>
      %62 = arith.addf %60, %61 : vector<8x4xf32>
      %c0_44 = arith.constant 0 : index
      %c0_45 = arith.constant 0 : index
      %63 = vector.load %arg10[%c0_44, %c0_45] : memref<8x1xf32, #tpu.memory_space<vmem>>, vector<8x1xf32>
      %64 = vector.broadcast %63 : vector<8x1xf32> to vector<8x4xf32>
      %65 = vector.broadcast %47 : vector<1x4xf32> to vector<8x4xf32>
      %66 = arith.addf %64, %65 : vector<8x4xf32>
      %cst_46 = arith.constant 1.000000e+00 : f32
      %67 = vector.broadcast %cst_46 : f32 to vector<8x4xf32>
      %68 = arith.addf %66, %67 : vector<8x4xf32>
      %69 = arith.divf %62, %68 : vector<8x4xf32>
      %cst_47 = arith.constant 1.000000e+00 : f32
      %70 = vector.broadcast %cst_47 : f32 to vector<8x4xf32>
      %71 = arith.subf %70, %69 : vector<8x4xf32>
      %cst_48 = arith.constant 5.000000e+00 : f32
      %72 = vector.broadcast %cst_48 : f32 to vector<8x4xf32>
      %73 = arith.mulf %72, %58 : vector<8x4xf32>
      %cst_49 = arith.constant 2.000000e+00 : f32
      %74 = vector.broadcast %cst_49 : f32 to vector<8x4xf32>
      %75 = arith.mulf %74, %50 : vector<8x4xf32>
      %76 = arith.addf %73, %75 : vector<8x4xf32>
      %cst_50 = arith.constant 5.000000e+00 : f32
      %77 = vector.broadcast %cst_50 : f32 to vector<8x4xf32>
      %78 = arith.mulf %77, %71 : vector<8x4xf32>
      %79 = arith.addf %76, %78 : vector<8x4xf32>
      %c0_51 = arith.constant 0 : index
      %c0_52 = arith.constant 0 : index
      %c0_53 = arith.constant 0 : index
      %80 = vector.load %arg7[%c0_51, %c0_52, %c0_53] : memref<1x8x4xf32, #tpu.memory_space<vmem>>, vector<1x8x4xf32>
      %81 = vector.shape_cast %80 : vector<1x8x4xf32> to vector<8x4xf32>
      %82 = vector.shape_cast %79 : vector<8x4xf32> to vector<1x8x4xf32>
      tpu.vector_store %arg7[%c0_51, %c0_52, %c0_53], %82 {strides = array<i32>} : memref<1x8x4xf32, #tpu.memory_space<vmem>>, vector<1x8x4xf32>,
    } else {
    }
    return
  }
  func.func @transform_0(%arg0: i32, %arg1: i32) -> (i32, i32, i32) {
    %c0_i32 = arith.constant 0 : i32
    %c0_i32_0 = arith.constant 0 : i32
    %c0_i32_1 = arith.constant 0 : i32
    return %arg0, %c0_i32, %c0_i32_0 : i32, i32, i32
  }
  func.func @transform_1(%arg0: i32, %arg1: i32) -> (i32, i32, i32) {
    %c0_i32 = arith.constant 0 : i32
    %c0_i32_0 = arith.constant 0 : i32
    %c0_i32_1 = arith.constant 0 : i32
    return %arg0, %c0_i32, %c0_i32_0 : i32, i32, i32
  }
  func.func @transform_2(%arg0: i32, %arg1: i32) -> (i32, i32, i32) {
    %c0_i32 = arith.constant 0 : i32
    %c0_i32_0 = arith.constant 0 : i32
    %c0_i32_1 = arith.constant 0 : i32
    return %arg0, %c0_i32, %c0_i32_0 : i32, i32, i32
  }
  func.func @transform_3(%arg0: i32, %arg1: i32) -> (i32, i32, i32) {
    %c0_i32 = arith.constant 0 : i32
    %c0_i32_0 = arith.constant 0 : i32
    return %arg0, %c0_i32, %arg1 : i32, i32, i32
  }
  func.func @transform_4(%arg0: i32, %arg1: i32) -> (i32, i32, i32) {
    %c0_i32 = arith.constant 0 : i32
    %c0_i32_0 = arith.constant 0 : i32
    return %arg0, %c0_i32, %arg1 : i32, i32, i32
  }
  func.func @transform_5(%arg0: i32, %arg1: i32) -> (i32, i32, i32) {
    %c0_i32 = arith.constant 0 : i32
    %c0_i32_0 = arith.constant 0 : i32
    %c0_i32_1 = arith.constant 0 : i32
    return %arg0, %c0_i32, %c0_i32_0 : i32, i32, i32
  }
}

</mosaic_0001>

<bundles_post_ra>
// kernel: tpu_custom_call.1
= control target key start
LH: loop header
LB: loop body
LE: loop exit
PB: predicated region body
PF: predicated region fallthrough
CT: control target
= control target key end

     0   :  { %10 = vsyncpa [#allocation6], 0  ;;  %s1124_s0 = inlined_call_operand.vmem [shape: f32[2,8,5], index: 0, kind: input, shape index: {}]   ;;  %s1125_s1 = inlined_call_operand.vmem [shape: f32[2,4,5], index: 1, kind: input, shape index: {}]   ;;  %s1126_s2 = inlined_call_operand.hbm [shape: f32[2,1,4], index: 2, kind: input, shape index: {}]   ;;  %s1127_s3 = inlined_call_operand.vmem [shape: bf16[2,8,256], index: 3, kind: input, shape index: {}]   ;;  %s1128_s4 = inlined_call_operand.vmem [shape: bf16[2,4,256], index: 4, kind: input, shape index: {}]   ;;  %s1129_s5 = inlined_call_operand.vmem [shape: f32[2,8,4], index: 5, kind: output, shape index: {}]  }
   0x1   :  { %12 = vsyncpa [#allocation6 + $0x1], 0  ;;  %s971_s18 = smov 0   ;;  %s973_s19 = smov 0  }
   0x2   :  { %s975_s20 = smov 0   ;;  %s977_s21 = smov 0  }
   0x3   :  { %s979_s22 = smov 0   ;;  %s981_s23 = smov 0  }
   0x4 LB: > { %s751_s24 = sadd.s32 4294967295, %s935_s23   ;;  %s30_s25 = sadd.s32 1, %s931_s22  ;;  %s935_s23 = sphi %s981_s23, %s18_s23   ;;  %s931_s22 = sphi %s979_s22, %s1139_s22   ;;  %s927_s21 = sphi %s977_s21, %s1138_s21   ;;  %s923_s20 = sphi %s975_s20, %s1137_s20   ;;  %s919_s19 = sphi %s973_s19, %s1136_s19   ;;  %s915_s18 = sphi %s971_s18, %s1135_s18  }
   0x5   : > { %p32_p0 = scmp.ge.s32.totalorder %s30_s25, 2  ;;  %s89_s26 = sadd.s32 1, %s923_s20 }
   0x6   : > { %p96_p1 = scmp.ne.s32.totalorder %s923_s20, %s919_s19  ;;  %p97_p2 = scmp.eq.s32.totalorder %s935_s23, 0 }
   0x7   : > { %s1141_s25 = smov (%p32_p0, %s30_s25), 0  ;;  %p102_p4 = scmp.ne.s32.totalorder %s919_s19, %s915_s18 }
   0x8   : > { %p1007_p3 = por %p97_p2, %p96_p1  ;;  %s86_s28 = ssub.s32 %s931_s22, %s1141_s25 }
   0x9   : > { %p103_p5 = scmp.eq.s32.totalorder %s751_s24, 0  ;;  %p87_p6 = scmp.eq.s32.totalorder %s86_s28, 0 }
   0xa   : > { %p787_p8 = scmp.lt.s32.totalorder %s935_s23, 2  ;;  %s222_s6 = sand.u32 1, %s923_s20  }
   0xb   : > { %p1014_p7 = por %p103_p5, %p102_p4  ;;  %s755_s7 = sshll.u32 %s931_s22, 4 }
   0xc   : > { %s1020_s30 = scalar_select %p87_p6, %s923_s20, %s89_s26  }
   0xd   : > { %s230_s10 = scalar_lea.hbm %s1126_s2, %s755_s7  ;;  %s225_s11 = scalar_lea.vmem [#allocation5], %s222_s6 }
   0xe   : > { %s232_s12 = sshll.u32 %s225_s11, 4  ;;  %p1029_p9 = pnand %p787_p8, %p1007_p3  ;;  %s233_s12 = int_to_ptr.vmem [resolvable:$true] %s232_s12 }
   0xf   : > { %p756_p10 = scmp.ge.s32.totalorder %s935_s23, 1  ;;  %p263_p11 = scmp.lt.s32.totalorder %s935_s23, 3 }
  0x10   : > { %s223_s14 = scalar_lea.sflag [#allocation6], %s222_s6  ;;  %p859_p12 = pneg %p1029_p9 }
  0x11   : > { %s870_s15 = scalar_lea.vmem %s233_s12, 16  ;;  %s937_s16 = smov [#allocation5]  }
  0x12   : > { %p871_p13 = scmp.ne.s32.totalorder %s233_s12, %s870_s15  ;;  %s875_s17 = sshll.u32 %s937_s16, 4  ;;  %s876_s17 = int_to_ptr.vmem [resolvable:$false] %s875_s17 }
  0x13   : > { %s877_s18 = scalar_lea.vmem %s876_s17, 32  ;;  %p878_p2 = scmp.lt.s32.totalorder %s233_s12, %s876_s17 }
  0x14   : > { %p873_p0 = pnand %p871_p13, %p859_p12  ;;  %p879_p4 = scmp.lt.s32.totalorder %s877_s18, %s870_s15 }
  0x16   : > { %p874_p1 = pneg %p873_p0  ;;  %p880_p3 = por %p879_p4, %p878_p2 }
  0x18   : > { %p881_p5 = pnand %p880_p3, %p874_p1 }
  0x1a   : > { %884 = shalt.err (!%p881_p5)
}
  0x1b   : > { %786 = dma.hbm_to_vmem [thread:$0]  (!%p1029_p9), %s230_s10, 16, %s233_s12, %s223_s14  }
  0x1c   : > { %p264_p6 = pnand %p756_p10, %p263_p11 }
  0x1d   : > { %s269_s24 = sand.u32 (!%p264_p6), 1, %s919_s19  }
  0x1e   : > { %267 = sbr.rel (%p264_p6) target bundleno = 385 (0x181), region = 40  ;;  %s270_s26 = scalar_lea.sflag (!%p264_p6), [#allocation6], %s269_s24 }
  0x1f   : > { %s1044_s27 = scalar_lea.vmem (!%p264_p6), [#allocation5], %s269_s24 }
  0x23   : > { %910 = dma.done.wait (%p1014_p7), %s270_s26, 16  }
  0x24   : > { %912 = vsyncadd (%p1014_p7), %s270_s26, 4294967280  ;;  %p323_p8 = scmp.lt.s32.totalorder %s927_s21, 1  ;;  %v938_v0 = vmov 0.0   ;;  %vm939_vm0 = vmmov 0   ;;  %vm363_vm1 = vcmask 7168   ;;  %vm508_vm2 = vcmask 39936  }
  0x25   : > { %776 = vmatprep.subr.mxu1 %v938_v0  ;;  %778 = vmatprep.mubr.msk.f32.mxu1 %vm939_vm0, %v938_v0  ;;  %365 = vst.msk [vmem:[#allocation4] sm:$0xff] %vm363_vm1, %v938_v0  ;;  %364 = vst.msk [vmem:[#allocation3] sm:$0xff] %vm363_vm1, %v938_v0  ;;  %vm421_vm5 = vcmask 1043456   ;;  %v940_v53 = vmov 0   ;;  %vm360_vm8 = vcmask 31744  }
  0x26   : > { %s1143_s21 = smov (!%p323_p8, %s927_s21), 1  ;;  %839 = vset.pattern.permute.xlu1 %v940_v53  ;;  %840 = vset.pattern.permute.xlu0 %v940_v53  ;;  %361 = vst.msk [vmem:[#allocation2] sm:$0xff] %vm360_vm8, %v938_v0  ;;  %362 = vst.msk [vmem:[#allocation2 + $0x8] sm:$0xff] %vm360_vm8, %v938_v0 }
  0x27   : > { %s1058_s28 = sshll.u32 %s1143_s21, 3  ;;  %s758_s29 = sshll.u32 %s1143_s21, 2 }
  0x28   : > { %s339_s8 = scalar_lea.vmem %s1127_s3, %s1058_s28  ;;  %s349_s11 = scalar_lea.vmem %s1128_s4, %s758_s29 }
  0x29   : > { %s330_s14 = scalar_lea.vmem %s1125_s1, %s758_s29  ;;  %s326_s17 = scalar_lea.vmem %s1124_s0, %s1058_s28  ;;  %v1074_v1 = vld [vmem:[%s339_s8] sm:$0xff] }
  0x2a   : > { %v766_v2 = vld.sshfl [vmem:[%s349_s11] sm:$0x33 pattern:$0x76325410]  ;;  %v368_v3 = vunpack.c.l.bf16 %v1074_v1  ;;  %v369_v4 = vunpack.c.h.bf16 %v1074_v1  ;;  %v764_v40 = vcombine.low %v1074_v1, %v1074_v1  ;;  %v765_v44 = vcombine.high %v1074_v1, %v1074_v1  ;;  %s354_s24 = scalar_lea.vmem %s1129_s5, %s1058_s28 }
  0x2b   : > { %v440_v5 = vcombine.high %v766_v2, %v766_v2  ;;  %v506_v6 = vld [vmem:[%s330_s14] sm:$0xf] }
  0x2c   : > { %777 = vmatpush3.xpose.msk.msra.mxu1 %vm508_vm2, %v506_v6  ;;  %v505_v7 = vld [vmem:[%s326_s17] sm:$0xff]  ;;  %v370_v8 = vand.u32 2147483647, %v368_v3  ;;  %v371_v9 = vand.u32 2147483647, %v369_v4  ;;  %vm404_vm3 = vcmp.ge.f32.partialorder %v368_v3, 0.0 }
  0x2d   : > { %457 = vmatprep.subr.bf16.mxu0 %v440_v5  ;;  %vm405_vm4 = vcmp.ge.f32.partialorder %v369_v4, 0.0  ;;  %v378_v30 = vmax.f32 %v368_v3, 0.0  ;;  %v379_v35 = vmax.f32 %v369_v4, 0.0  ;;  %v496_v54 = vld [vmem:[#allocation4] sm:$0xff]  ;;  %v489_v57 = vld [vmem:[#allocation3] sm:$0xff]  ;;  %v430_v1 = vld [vmem:[#allocation2] sm:$0xff] }
  0x2e   : > { %458 = vmatpush1.bf16.xpose.msra.mxu0 %v766_v2  ;;  %v372_v10 = vsub.f32 0.0, %v370_v8  ;;  %v373_v11 = vsub.f32 0.0, %v371_v9  ;;  %v431_v4 = vld [vmem:[#allocation2 + $0x8] sm:$0xff]  ;;  %v769_v8 = vld [vmem:[%s1044_s27] ss:$0 sm:$0xff] }
  0x2f   : > { %779 = vmatmul.mubr.msk.f32.vlgmr.msra.gmra.mxu1 %vm508_vm2, %v505_v7 }
  0x30   : > { %v374_v12 = vmul.f32 1.442695, %v372_v10  ;;  %v376_v13 = vmul.f32 1.442695, %v373_v11 }
  0x32   : > { %843 = vpow2.f32 %v374_v12 }
  0x33   : > { %845 = vpow2.f32 %v376_v13 }
  0x3f   : > { %v844_v14 = vpop.eup %843 }
  0x40   : > { %v846_v15 = vpop.eup %845  ;;  %v380_v16 = vadd.f32 1.0, %v844_v14  ;;  %v383_v18 = vmul.f32 -0.5, %v844_v14  ;;  %v386_v21 = vand.u32 2147483647, %v844_v14 }
  0x41   : > { %v389_v17 = vadd.f32 1.0, %v846_v15  ;;  %v392_v19 = vmul.f32 -0.5, %v846_v15  ;;  %v395_v23 = vand.u32 2147483647, %v846_v15 }
  0x42   : > { %847 = vrcp.f32 %v380_v16  ;;  %v384_v20 = vadd.f32 1.0, %v383_v18  ;;  %vm1080_vm6 = vcmp.lt.f32.partialorder %v386_v21, 0.0004427343 }
  0x43   : > { %849 = vrcp.f32 %v389_v17  ;;  %v393_v22 = vadd.f32 1.0, %v392_v19  ;;  %vm396_vm7 = vcmp.lt.f32.partialorder %v395_v23, 0.0004427343 }
  0x44   : > { %851 = vlog2.f32 %v380_v16  ;;  %v385_v27 = vmul.f32 %v844_v14, %v384_v20 }
  0x45   : > { %853 = vlog2.f32 %v389_v17  ;;  %v394_v32 = vmul.f32 %v846_v15, %v393_v22 }
  0x4f   : > { %v848_v24 = vpop.eup %847 }
  0x50   : > { %v850_v25 = vpop.eup %849  ;;  %v406_v26 = vmul.f32 %v848_v24, %v844_v14 }
  0x51   : > { %v852_v28 = vpop.eup %851  ;;  %v407_v29 = vmul.f32 %v850_v25, %v846_v15 }
  0x52   : > { %v854_v33 = vpop.eup %853  ;;  %v408_v34 = vsel %vm404_vm3, %v848_v24, %v406_v26  ;;  %v382_v36 = vmul.f32 0.6931472, %v852_v28 }
  0x53   : > { %v409_v37 = vsel %vm405_vm4, %v850_v25, %v407_v29  ;;  %v410_v38 = vpack.c.bf16 %v408_v34, %v408_v34  ;;  %v391_v39 = vmul.f32 0.6931472, %v854_v33 }
  0x54   : > { %v411_v41 = vpack.c.bf16 %v409_v37, %v409_v37  ;;  %v497_v42 = vadd.f32 %v409_v37, %v408_v34  ;;  %v388_v43 = vsel %vm1080_vm6, %v385_v27, %v382_v36 }
  0x55   : > { %v419_v45 = vrot.slane %v410_v38, 4  ;;  %v397_v46 = vsel %vm396_vm7, %v394_v32, %v391_v39  ;;  %v398_v47 = vadd.f32 %v388_v43, %v378_v30 }
  0x56   : > { %v420_v48 = vrot.slane %v411_v41, 4  ;;  %498 = vadd.xlane.f32.xlu0 %v497_v42  ;;  %v399_v49 = vadd.f32 %v397_v46, %v379_v35 }
  0x57   : > { %v424_v50 = vsel %vm421_vm5, %v764_v40, %v419_v45 }
  0x58   : > { %v490_v51 = vadd.f32 %v399_v49, %v398_v47  ;;  %v428_v52 = vsel %vm421_vm5, %v765_v44, %v420_v48 }
  0x59   : > { %475 = vmatprep.mubr.bf16.mxu0 %v428_v52 }
  0x5a   : > { %491 = vadd.xlane.f32.xlu0 %v490_v51  ;;  %476 = vmatmul.mubr.bf16.vlgmr.msra.gmra.mxu0 %v424_v50 }
  0xdf   : > { %v499_v55 = vpop.xlane.xlu0 %498 }
  0xe0   : > { %v500_v56 = vadd.f32 %v499_v55, %v496_v54 }
  0xe2   : > { %501 = vst.msk [vmem:[#allocation4] sm:$0xff] %vm363_vm1, %v500_v56 }
  0xe3   : > { %v492_v58 = vpop.xlane.xlu0 %491 }
  0xe4   : > { %v493_v59 = vadd.f32 %v492_v58, %v489_v57 }
  0xe6   : > { %495 = vst.msk [vmem:[#allocation3] sm:$0xff] %vm363_vm1, %v493_v59 }
  0xe9   : > { %v598_v60 = vld [vmem:[#allocation4] sm:$0xff] }
  0xea   : > { %601 = vperm.xlu1 %839, %v598_v60  }
  0xed   : > { %v588_v61 = vld [vmem:[#allocation3] sm:$0xff] }
  0xee   : > { %591 = vperm.xlu1 %839, %v588_v61  }
  0xef   : > { %v581_v62 = vpop.f32.mrf.mxu1 }
  0xf0   : > { %v585_v18 = vsub.f32 0.0, %v581_v62 }
  0xf1   : > { %v780_v63 = vpop.f32.mrf.mxu1 }
  0xf2   : > { %v616_v23 = vmul.f32 2.0, %v585_v18 }
 0x11a   : > { %v477_v2 = vpop.f32.mrf.mxu0 }
 0x11b   : > { %v484_v0 = vadd.f32 %v477_v2, %v430_v1 }
 0x11c   : > { %v479_v3 = vpop.f32.mrf.mxu0 }
 0x11d   : > { %487 = vst.msk [vmem:[#allocation2] sm:$0xff] %vm360_vm8, %v484_v0 }
 0x11e   : > { %v480_v5 = vpop.f32.mrf.mxu0 }
 0x11f   : > { %v485_v6 = vadd.f32 %v480_v5, %v431_v4 }
 0x120   : > { %v482_v7 = vpop.f32.mrf.mxu0 }
 0x121   : > { %488 = vst.msk [vmem:[#allocation2 + $0x8] sm:$0xff] %vm360_vm8, %v485_v6 }
 0x124   : > { %v586_v13 = vld [vmem:[#allocation2] sm:$0xff] }
 0x128   : > { %v587_v14 = vld [vmem:[#allocation2 + $0x8] sm:$0xff] }
 0x129   : > { %v596_v16 = vmul.f32 2.0, %v587_v14 }
 0x12b   : > { %v597_v19 = vadd.f32 1.0, %v596_v16 }
 0x165   : > { %v602_v9 = vpop.permute.xlu1 %601 }
 0x166   : > { %v610_v10 = vadd.f32 %v769_v8, %v602_v9 }
 0x168   : > { %v611_v11 = vadd.f32 1.0, %v610_v10 }
 0x169   : > { %v592_v12 = vpop.permute.xlu1 %591 }
 0x16a   : > { %855 = vrcp.f32 %v611_v11  ;;  %v594_v15 = vsub.f32 %v592_v12, %v586_v13 }
 0x16c   : > { %v595_v17 = vmul.f32 0.00390625, %v594_v15 }
 0x16e   : > { %v615_v21 = vmul.f32 5.0, %v595_v17 }
 0x170   : > { %v617_v25 = vadd.f32 %v616_v23, %v615_v21 }
 0x177   : > { %v856_v20 = vpop.eup %855 }
 0x178   : > { %v613_v22 = vmul.f32 %v856_v20, %v597_v19 }
 0x17a   : > { %v614_v24 = vsub.f32 1.0, %v613_v22 }
 0x17c   : > { %v618_v26 = vmul.f32 5.0, %v614_v24 }
 0x17e   : > { %v619_v27 = vadd.f32 %v618_v26, %v617_v25 }
 0x180   : > { %620 = vst.msk [vmem:[%s354_s24] sm:$0xff] %vm360_vm8, %v619_v27 }
 0x181 PF: > { %s18_s23 = sadd.s32 1, %s935_s23   ;;  %s1135_s18 = smov %s919_s19 }
 0x182   : > { %p15_p7 = scmp.ge.s32.totalorder %s18_s23, 4   ;;  %s1136_s19 = smov %s923_s20 }
 0x183   : > { %s1137_s20 = smov %s1020_s30  ;;  %s1138_s21 = smov %s931_s22 }
 0x184   : > { %s1139_s22 = smov %s1141_s25  ;;  %17 = sbr.rel (!%p15_p7) target bundleno = 4 (0x4), region = 100 }
 0x189   :  { %640 = vsyncpa [#allocation6], 1 }
 0x18a   :  { %642 = vsyncpa [#allocation6 + $0x1], 1 }

</bundles_post_ra>
